<compile_context>
chip_gen: v7x
topology: tpu7x:2x2x1
jax: 0.10.0
libtpu: 0.0.40
codegen_flags: <defaults>
</compile_context>

<pallas_src>
import functools
import math

import jax
import jax.numpy as jnp
from jax import lax
from jax.experimental import pallas as pl
from jax.experimental.pallas import tpu as pltpu


# ---------------------------------------------------------------------------
# Tiling helpers (never fall back to a full-dim block on the tiled axis unless
# the dimension is genuinely small; always respect a per-generation VMEM budget).
# ---------------------------------------------------------------------------
def _round_up(n: int, m: int) -> int:
    return ((n + m - 1) // m) * m


def _pick_lane_tile(d: int, itemsize: int, budget_bytes: int = 8 << 20) -> int:
    """Lane tile for the weight-streaming matmul: multiple of 128, divides d,
    and 2x double-buffered (d, tn) weight tiles fit in `budget_bytes`."""
    cap = max(128, budget_bytes // (2 * d * itemsize))
    for c in (512, 256, 128):
        if c <= cap and d % c == 0:
            return c
    return d  # tiny-D fallback (e.g. toy shapes); lane-masked stores but correct.


def _pick_seq_tile(s: int, d: int, batch: int, itemsize: int,
                   budget_bytes: int = 10 << 20):
    """Sequence tile: multiple of 8, divides s (else pad), and the double-buffered
    in+out (ts, d) tiles fit in `budget_bytes`.  Returns (ts, pad)."""
    cap = max(8, budget_bytes // (4 * d * itemsize))
    ts = None
    for c in (1024, 512, 256, 128, 64, 32, 16, 8):
        if c <= cap and s % c == 0:
            ts = c
            break
    if ts is None:
        # No clean divisor: pad S up to a multiple of a capped tile.
        ts = max(8, min(256, (cap // 8) * 8))
        return ts, _round_up(s, ts) - s
    # v7x has 2 TensorCores: keep the parallel grid length >= 2 when possible.
    if batch * (s // ts) < 2:
        for c in (512, 256, 128, 64, 32, 16, 8):
            if c < ts and s % c == 0:
                ts = c
                break
    return ts, 0


# ---------------------------------------------------------------------------
# Kernel 1: fused SiLU + Linear(D -> 6D) + bias, emitted as a (6, B, D) table
# ---------------------------------------------------------------------------
def _silu_linear_kernel(e_ref, w_ref, b_ref, o_ref):
    # e_ref: (Bp, D)  w_ref: (D, tn)  b_ref: (1, 1, tn)  o_ref: (1, Bp, tn)
    #
    # SiLU is recomputed per grid step on the tiny resident (Bp, D) block.  It is a few
    # hundred EUP/VPU ops fully hidden under the weight-tile DMA; hoisting it into a
    # persistent scratch under pl.when(program_id == 0) would be unsafe on v7x megacore
    # (each TensorCore has private VMEM scratch and only one core sees step 0).
    e = e_ref[...].astype(jnp.float32)            # SiLU math in f32 (v5e EUP has no bf16)
    h = (e * jax.nn.sigmoid(e)).astype(w_ref.dtype)
    # Weight tile used in its NATIVE dtype (bf16 is native on the MXU); f32 accumulation.
    acc = jnp.dot(h, w_ref[...], preferred_element_type=jnp.float32)
    acc = acc + b_ref[0].astype(jnp.float32)      # bias added exactly once per output tile
    o_ref[0] = acc.astype(o_ref.dtype)


def silu_linear_chunked(emb, w, bias, num_chunks):
    """silu(emb) @ w + bias with w laid out [in, out]; output shaped (num_chunks, B, D)."""
    B, D = emb.shape
    N = w.shape[1]
    assert N == num_chunks * D and bias.shape == (N,)

    Bp = _round_up(B, 8)                           # sublane-align the tiny batch dim
    if Bp != B:
        emb = jnp.pad(emb, ((0, Bp - B), (0, 0)))

    tn = _pick_lane_tile(D, jnp.dtype(w.dtype).itemsize)
    nd = D // tn if D % tn == 0 else 1
    if D % tn != 0:                                # tiny-D fallback: one tile per chunk
        tn = D
        nd = 1
    bias3 = bias.reshape(num_chunks, 1, D)

    out = pl.pallas_call(
        _silu_linear_kernel,
        out_shape=jax.ShapeDtypeStruct((num_chunks, Bp, D), emb.dtype),
        grid_spec=pltpu.PrefetchScalarGridSpec(
            num_scalar_prefetch=0,
            grid=(num_chunks, nd),
            in_specs=[
                pl.BlockSpec((Bp, D), lambda c, j: (0, 0)),          # activations resident
                pl.BlockSpec((D, tn), lambda c, j: (0, c * nd + j)),  # weights streamed
                pl.BlockSpec((1, 1, tn), lambda c, j: (c, 0, j)),     # bias
            ],
            out_specs=pl.BlockSpec((1, Bp, tn), lambda c, j: (c, 0, j)),
        ),
        compiler_params=pltpu.CompilerParams(
            dimension_semantics=("parallel", "parallel"),
            vmem_limit_bytes=32 * 1024 * 1024),
    )(emb, w, bias3)
    return out[:, :B]                               # drop padded batch rows (leading-dim view)


# ---------------------------------------------------------------------------
# Kernel 2: fused no-affine LayerNorm + adaLN-Zero modulation
# ---------------------------------------------------------------------------
def _norm_modulate_kernel(x_ref, scale_ref, shift_ref, o_ref, *, eps):
    # x_ref: (1, ts, D)   scale_ref / shift_ref: (1, 1, D)   o_ref: (1, ts, D)
    x = x_ref[...].astype(jnp.float32)
    mean = jnp.mean(x, axis=-1, keepdims=True)
    xc = x - mean
    var = jnp.mean(xc * xc, axis=-1, keepdims=True)       # biased variance (PyTorch LN)
    xn = xc * lax.rsqrt(var + eps)
    scale = scale_ref[...].astype(jnp.float32)
    shift = shift_ref[...].astype(jnp.float32)
    o_ref[...] = (xn * (1.0 + scale) + shift).astype(o_ref.dtype)


def norm_modulate(x, scale, shift, *, eps=1e-6):
    """LayerNorm(x, no affine, eps) * (1 + scale[:, None]) + shift[:, None], fused."""
    B, S, D = x.shape
    ts, pad = _pick_seq_tile(S, D, B, jnp.dtype(x.dtype).itemsize)
    if pad:
        x = jnp.pad(x, ((0, 0), (0, pad), (0, 0)))        # rare fallback for ragged S
    Sg = x.shape[1]
    scale3 = scale.reshape(B, 1, D)
    shift3 = shift.reshape(B, 1, D)

    out = pl.pallas_call(
        functools.partial(_norm_modulate_kernel, eps=eps),
        out_shape=jax.ShapeDtypeStruct((B, Sg, D), x.dtype),
        grid_spec=pltpu.PrefetchScalarGridSpec(
            num_scalar_prefetch=0,
            grid=(B, Sg // ts),
            in_specs=[
                pl.BlockSpec((1, ts, D), lambda b, s: (b, s, 0)),
                pl.BlockSpec((1, 1, D), lambda b, s: (b, 0, 0)),
                pl.BlockSpec((1, 1, D), lambda b, s: (b, 0, 0)),
            ],
            out_specs=pl.BlockSpec((1, ts, D), lambda b, s: (b, s, 0)),
        ),
        compiler_params=pltpu.CompilerParams(
            dimension_semantics=("parallel", "parallel"),
            vmem_limit_bytes=32 * 1024 * 1024),
    )(x, scale3, shift3)
    return out[:, :S] if pad else out


# ---------------------------------------------------------------------------
# CombinedTimestepLabelEmbeddings (plain JAX)
# ---------------------------------------------------------------------------
# TODO(synk): the sinusoidal timestep projection, the 256-wide timestep MLP and the
# label-embedding gather are batch-sized (a handful of rows) with no profitable Pallas
# formulation; they are computed in plain JAX here.
def _sinusoidal_timestep_embedding(timesteps, dim=256, flip_sin_to_cos=True,
                                   downscale_freq_shift=1.0, max_period=10000.0):
    half = dim // 2
    exponent = (-math.log(max_period)
                * jnp.arange(half, dtype=jnp.float32) / (half - downscale_freq_shift))
    freqs = jnp.exp(exponent)
    args = timesteps.astype(jnp.float32)[:, None] * freqs[None, :]
    emb = jnp.concatenate([jnp.sin(args), jnp.cos(args)], axis=-1)
    if flip_sin_to_cos:
        emb = jnp.concatenate([emb[:, half:], emb[:, :half]], axis=-1)
    return emb


def combined_timestep_label_embeddings(params, timestep, class_labels,
                                       hidden_dtype=jnp.float32):
    t_proj = _sinusoidal_timestep_embedding(timestep).astype(hidden_dtype)
    h = t_proj @ params["time_w1"] + params["time_b1"]
    h = jax.nn.silu(h)
    t_emb = h @ params["time_w2"] + params["time_b2"]
    c_emb = params["class_table"][class_labels]
    return (t_emb + c_emb).astype(hidden_dtype)


# ---------------------------------------------------------------------------
# AdaLayerNormZero forward
# ---------------------------------------------------------------------------
def ada_layer_norm_zero(params, x, timestep, class_labels, hidden_dtype=jnp.float32):
    cond = combined_timestep_label_embeddings(params, timestep, class_labels, hidden_dtype)
    # (6, B, D) modulation table: leading-dim chunks are free views, no column-slice copies.
    table = silu_linear_chunked(cond, params["ada_w"], params["ada_b"], num_chunks=6)
    shift_msa, scale_msa, gate_msa, shift_mlp, scale_mlp, gate_mlp = (
        table[0], table[1], table[2], table[3], table[4], table[5])
    x_out = norm_modulate(x, scale_msa, shift_msa, eps=1e-6)
    return x_out, gate_msa, shift_mlp, scale_mlp, gate_mlp


# ---------------------------------------------------------------------------
# Parameter init + pure-JAX reference for verification
# ---------------------------------------------------------------------------
def init_params(key, embedding_dim, num_embeddings, time_proj_dim=256):
    D = embedding_dim
    ks = jax.random.split(key, 4)

    def lin(k, fan_in, fan_out):
        bound = 1.0 / math.sqrt(fan_in)
        kw, kb = jax.random.split(k)
        w = jax.random.uniform(kw, (fan_in, fan_out), jnp.float32, -bound, bound)
        b = jax.random.uniform(kb, (fan_out,), jnp.float32, -bound, bound)
        return w, b

    time_w1, time_b1 = lin(ks[0], time_proj_dim, D)
    time_w2, time_b2 = lin(ks[1], D, D)
    # +1 row: LabelEmbedding's classifier-free-guidance slot (class_dropout_prob > 0).
    class_table = jax.random.normal(ks[2], (num_embeddings + 1, D), jnp.float32)
    # NOTE: params["ada_w"] / ["ada_b"] may be stored in bf16 in production; the kernel
    # consumes them in their native dtype (no in-kernel upcast) for ~2x HBM savings.
    ada_w, ada_b = lin(ks[3], D, 6 * D)
    return dict(time_w1=time_w1, time_b1=time_b1,
                time_w2=time_w2, time_b2=time_b2,
                class_table=class_table, ada_w=ada_w, ada_b=ada_b)


def reference_forward(params, x, timestep, class_labels, eps=1e-6):
    cond = combined_timestep_label_embeddings(params, timestep, class_labels)
    emb = jax.nn.silu(cond) @ params["ada_w"] + params["ada_b"]
    shift_msa, scale_msa, gate_msa, shift_mlp, scale_mlp, gate_mlp = jnp.split(emb, 6, axis=1)
    mean = jnp.mean(x, axis=-1, keepdims=True)
    var = jnp.mean((x - mean) ** 2, axis=-1, keepdims=True)
    xn = (x - mean) / jnp.sqrt(var + eps)
    x_out = xn * (1.0 + scale_msa[:, None, :]) + shift_msa[:, None, :]
    return x_out, gate_msa, shift_mlp, scale_mlp, gate_mlp


if __name__ == "__main__":
    B, S, D = 2, 16, 128          # batch, sequence, embedding_dim (lane-aligned D)
    num_embeddings = 10

    key = jax.random.PRNGKey(0)
    k_par, k_x = jax.random.split(key, 2)
    params = init_params(k_par, D, num_embeddings)
    x = jax.random.normal(k_x, (B, S, D), jnp.float32)
    timestep = jnp.array([3.0, 17.0], jnp.float32)
    class_labels = jnp.array([1, 7], jnp.int32)

    fwd = jax.jit(functools.partial(ada_layer_norm_zero, params))
    out = jax.block_until_ready(fwd(x, timestep, class_labels))

    ref = reference_forward(params, x, timestep, class_labels)
    names = ("x", "gate_msa", "shift_mlp", "scale_mlp", "gate_mlp")
    for name, got, want in zip(names, out, ref):
        assert got.shape == want.shape, (name, got.shape, want.shape)
        assert jnp.allclose(got, want, rtol=1e-2, atol=1e-2), (
            name, float(jnp.max(jnp.abs(got - want))))

    print("KERNEL_OK")
</pallas_src>

<mosaic_0001>
module attributes {stable_mosaic.version = 11 : i64} {
  func.func @_norm_modulate_kernel(%arg0: i32, %arg1: i32, %arg2: memref<1x16x128xf32, #tpu.memory_space<vmem>>, %arg3: memref<1x1x128xf32, #tpu.memory_space<vmem>>, %arg4: memref<1x1x128xf32, #tpu.memory_space<vmem>>, %arg5: memref<1x16x128xf32, #tpu.memory_space<vmem>>) attributes {dimension_semantics = [#tpu.dimension_semantics<parallel>, #tpu.dimension_semantics<parallel>], iteration_bounds = array<i64: 2, 1>, scalar_prefetch = 0 : i64, scratch_operands = 0 : i64, tpu.core_type = #tpu.core_type<tc>, window_params = [{transform_indices = @transform_0, window_bounds = array<i64: 1, 16, 128>}, {transform_indices = @transform_1, window_bounds = array<i64: 1, 1, 128>}, {transform_indices = @transform_2, window_bounds = array<i64: 1, 1, 128>}, {transform_indices = @transform_3, window_bounds = array<i64: 1, 16, 128>}]} {
    %c0 = arith.constant 0 : index
    %c0_0 = arith.constant 0 : index
    %c0_1 = arith.constant 0 : index
    %0 = vector.load %arg2[%c0, %c0_0, %c0_1] : memref<1x16x128xf32, #tpu.memory_space<vmem>>, vector<1x16x128xf32>
    %cst = arith.constant dense<0.000000e+00> : vector<1x16xf32>
    %1 = vector.multi_reduction <add>, %0, %cst [2] : vector<1x16x128xf32> to vector<1x16xf32>
    %2 = vector.shape_cast %1 : vector<1x16xf32> to vector<1x16x1xf32>
    %cst_2 = arith.constant 1.280000e+02 : f32
    %3 = vector.broadcast %cst_2 : f32 to vector<1x16x1xf32>
    %4 = arith.divf %2, %3 : vector<1x16x1xf32>
    %5 = vector.broadcast %4 : vector<1x16x1xf32> to vector<1x16x128xf32>
    %6 = arith.subf %0, %5 : vector<1x16x128xf32>
    %7 = arith.mulf %6, %6 : vector<1x16x128xf32>
    %cst_3 = arith.constant dense<0.000000e+00> : vector<1x16xf32>
    %8 = vector.multi_reduction <add>, %7, %cst_3 [2] : vector<1x16x128xf32> to vector<1x16xf32>
    %9 = vector.shape_cast %8 : vector<1x16xf32> to vector<1x16x1xf32>
    %cst_4 = arith.constant 1.280000e+02 : f32
    %10 = vector.broadcast %cst_4 : f32 to vector<1x16x1xf32>
    %11 = arith.divf %9, %10 : vector<1x16x1xf32>
    %cst_5 = arith.constant 9.99999997E-7 : f32
    %12 = vector.broadcast %cst_5 : f32 to vector<1x16x1xf32>
    %13 = arith.addf %11, %12 : vector<1x16x1xf32>
    %14 = math.rsqrt %13 : vector<1x16x1xf32>
    %15 = vector.broadcast %14 : vector<1x16x1xf32> to vector<1x16x128xf32>
    %16 = arith.mulf %6, %15 : vector<1x16x128xf32>
    %c0_6 = arith.constant 0 : index
    %c0_7 = arith.constant 0 : index
    %c0_8 = arith.constant 0 : index
    %17 = vector.load %arg3[%c0_6, %c0_7, %c0_8] : memref<1x1x128xf32, #tpu.memory_space<vmem>>, vector<1x1x128xf32>
    %c0_9 = arith.constant 0 : index
    %c0_10 = arith.constant 0 : index
    %c0_11 = arith.constant 0 : index
    %18 = vector.load %arg4[%c0_9, %c0_10, %c0_11] : memref<1x1x128xf32, #tpu.memory_space<vmem>>, vector<1x1x128xf32>
    %cst_12 = arith.constant 1.000000e+00 : f32
    %19 = vector.broadcast %cst_12 : f32 to vector<1x1x128xf32>
    %20 = arith.addf %19, %17 : vector<1x1x128xf32>
    %21 = vector.broadcast %20 : vector<1x1x128xf32> to vector<1x16x128xf32>
    %22 = arith.mulf %16, %21 : vector<1x16x128xf32>
    %23 = vector.broadcast %18 : vector<1x1x128xf32> to vector<1x16x128xf32>
    %24 = arith.addf %22, %23 : vector<1x16x128xf32>
    %c0_13 = arith.constant 0 : index
    %c0_14 = arith.constant 0 : index
    %c0_15 = arith.constant 0 : index
    %25 = vector.load %arg5[%c0_13, %c0_14, %c0_15] : memref<1x16x128xf32, #tpu.memory_space<vmem>>, vector<1x16x128xf32>
    tpu.vector_store %arg5[%c0_13, %c0_14, %c0_15], %24 {strides = array<i32>} : memref<1x16x128xf32, #tpu.memory_space<vmem>>, vector<1x16x128xf32>,
    return
  }
  func.func @transform_0(%arg0: i32, %arg1: i32) -> (i32, i32, i32) {
    %c0_i32 = arith.constant 0 : i32
    %c0_i32_0 = arith.constant 0 : i32
    return %arg0, %arg1, %c0_i32 : i32, i32, i32
  }
  func.func @transform_1(%arg0: i32, %arg1: i32) -> (i32, i32, i32) {
    %c0_i32 = arith.constant 0 : i32
    %c0_i32_0 = arith.constant 0 : i32
    %c0_i32_1 = arith.constant 0 : i32
    return %arg0, %c0_i32, %c0_i32_0 : i32, i32, i32
  }
  func.func @transform_2(%arg0: i32, %arg1: i32) -> (i32, i32, i32) {
    %c0_i32 = arith.constant 0 : i32
    %c0_i32_0 = arith.constant 0 : i32
    %c0_i32_1 = arith.constant 0 : i32
    return %arg0, %c0_i32, %c0_i32_0 : i32, i32, i32
  }
  func.func @transform_3(%arg0: i32, %arg1: i32) -> (i32, i32, i32) {
    %c0_i32 = arith.constant 0 : i32
    %c0_i32_0 = arith.constant 0 : i32
    return %arg0, %arg1, %c0_i32 : i32, i32, i32
  }
}

module attributes {stable_mosaic.version = 11 : i64} {
  func.func @_silu_linear_kernel(%arg0: i32, %arg1: i32, %arg2: memref<8x128xf32, #tpu.memory_space<vmem>>, %arg3: memref<128x128xf32, #tpu.memory_space<vmem>>, %arg4: memref<1x1x128xf32, #tpu.memory_space<vmem>>, %arg5: memref<1x8x128xf32, #tpu.memory_space<vmem>>) attributes {dimension_semantics = [#tpu.dimension_semantics<parallel>, #tpu.dimension_semantics<parallel>], iteration_bounds = array<i64: 6, 1>, scalar_prefetch = 0 : i64, scratch_operands = 0 : i64, tpu.core_type = #tpu.core_type<tc>, window_params = [{pipeline_mode = #tpu.pipeline_mode<synchronous>, transform_indices = @transform_0, window_bounds = array<i64: 8, 128>}, {transform_indices = @transform_1, window_bounds = array<i64: 128, 128>}, {transform_indices = @transform_2, window_bounds = array<i64: 1, 1, 128>}, {transform_indices = @transform_3, window_bounds = array<i64: 1, 8, 128>}]} {
    %c0 = arith.constant 0 : index
    %c0_0 = arith.constant 0 : index
    %0 = vector.load %arg2[%c0, %c0_0] : memref<8x128xf32, #tpu.memory_space<vmem>>, vector<8x128xf32>
    %1 = arith.negf %0 : vector<8x128xf32>
    %2 = math.exp %1 : vector<8x128xf32>
    %cst = arith.constant 1.000000e+00 : f32
    %3 = vector.broadcast %cst : f32 to vector<8x128xf32>
    %4 = arith.addf %3, %2 : vector<8x128xf32>
    %5 = arith.divf %3, %4 : vector<8x128xf32>
    %6 = arith.mulf %0, %5 : vector<8x128xf32>
    %c0_1 = arith.constant 0 : index
    %c0_2 = arith.constant 0 : index
    %7 = vector.load %arg3[%c0_1, %c0_2] : memref<128x128xf32, #tpu.memory_space<vmem>>, vector<128x128xf32>
    %cst_3 = arith.constant dense<0.000000e+00> : vector<8x128xf32>
    %8 = tpu.matmul %6, %7, %cst_3 {dimension_numbers = #tpu.dot_dimension_numbers<[1], [0], [0], [1], [0, 0, 1, 1], [], []>} : vector<8x128xf32>, vector<128x128xf32>, vector<8x128xf32> -> vector<8x128xf32>
    %c0_4 = arith.constant 0 : index
    %c0_5 = arith.constant 0 : index
    %c0_6 = arith.constant 0 : index
    %9 = vector.load %arg4[%c0_4, %c0_5, %c0_6] : memref<1x1x128xf32, #tpu.memory_space<vmem>>, vector<1x1x128xf32>
    %10 = vector.shape_cast %9 : vector<1x1x128xf32> to vector<1x128xf32>
    %11 = vector.broadcast %10 : vector<1x128xf32> to vector<8x128xf32>
    %12 = arith.addf %8, %11 : vector<8x128xf32>
    %c0_7 = arith.constant 0 : index
    %c0_8 = arith.constant 0 : index
    %c0_9 = arith.constant 0 : index
    %13 = vector.load %arg5[%c0_7, %c0_8, %c0_9] : memref<1x8x128xf32, #tpu.memory_space<vmem>>, vector<1x8x128xf32>
    %14 = vector.shape_cast %13 : vector<1x8x128xf32> to vector<8x128xf32>
    %15 = vector.shape_cast %12 : vector<8x128xf32> to vector<1x8x128xf32>
    tpu.vector_store %arg5[%c0_7, %c0_8, %c0_9], %15 {strides = array<i32>} : memref<1x8x128xf32, #tpu.memory_space<vmem>>, vector<1x8x128xf32>,
    return
  }
  func.func @transform_0(%arg0: i32, %arg1: i32) -> (i32, i32) {
    %c0_i32 = arith.constant 0 : i32
    %c0_i32_0 = arith.constant 0 : i32
    %c0_i32_1 = arith.constant 0 : i32
    return %c0_i32, %c0_i32_0 : i32, i32
  }
  func.func @transform_1(%arg0: i32, %arg1: i32) -> (i32, i32) {
    %c1_i32 = arith.constant 1 : i32
    %0 = arith.muli %arg0, %c1_i32 : i32
    %1 = arith.addi %0, %arg1 : i32
    %c0_i32 = arith.constant 0 : i32
    %c0_i32_0 = arith.constant 0 : i32
    return %c0_i32, %1 : i32, i32
  }
  func.func @transform_2(%arg0: i32, %arg1: i32) -> (i32, i32, i32) {
    %c0_i32 = arith.constant 0 : i32
    %c0_i32_0 = arith.constant 0 : i32
    return %arg0, %c0_i32, %arg1 : i32, i32, i32
  }
  func.func @transform_3(%arg0: i32, %arg1: i32) -> (i32, i32, i32) {
    %c0_i32 = arith.constant 0 : i32
    %c0_i32_0 = arith.constant 0 : i32
    return %arg0, %c0_i32, %arg1 : i32, i32, i32
  }
}

</mosaic_0001>

<bundles_post_ra>
// kernel: ada_layer_norm_zero.2
= control target key start
LH: loop header
LB: loop body
LE: loop exit
PB: predicated region body
PF: predicated region fallthrough
CT: control target
= control target key end

     0   :  { %8 = vsyncpa [#allocation3], 0  ;;  %s848_s0 = inlined_call_operand.vmem [shape: f32[8,128], index: 0, kind: input, shape index: {}]   ;;  %s849_s1 = inlined_call_operand.hbm [shape: f32[128,768], index: 1, kind: input, shape index: {}]   ;;  %s850_s2 = inlined_call_operand.vmem [shape: f32[6,1,128], index: 2, kind: input, shape index: {}]   ;;  %s851_s3 = inlined_call_operand.vmem [shape: f32[6,8,128], index: 3, kind: output, shape index: {}]  }
   0x1   :  { %10 = vsyncpa [#allocation3 + $0x1], 0  ;;  %s698_s12 = smov 0   ;;  %s700_s13 = smov 0  }
   0x2   :  { %s702_s14 = smov 0   ;;  %s704_s15 = smov 0  }
   0x3   :  { %s706_s16 = smov 0   ;;  %s708_s17 = smov 0  }
   0x4 LB: > { %s435_s18 = sadd.s32 4294967295, %s669_s17   ;;  %s28_s19 = sadd.s32 1, %s665_s16  ;;  %s669_s17 = sphi %s708_s17, %s16_s17   ;;  %s665_s16 = sphi %s706_s16, %s860_s16   ;;  %s661_s15 = sphi %s704_s15, %s859_s15   ;;  %s657_s14 = sphi %s702_s14, %s858_s14   ;;  %s653_s13 = sphi %s700_s13, %s857_s13   ;;  %s649_s12 = sphi %s698_s12, %s856_s12  }
   0x5   : > { %p30_p0 = scmp.ge.s32.totalorder %s28_s19, 6  ;;  %s58_s20 = sadd.s32 1, %s657_s14 }
   0x6   : > { %p65_p1 = scmp.ne.s32.totalorder %s657_s14, %s653_s13  ;;  %p66_p2 = scmp.eq.s32.totalorder %s669_s17, 0 }
   0x7   : > { %s862_s19 = smov (%p30_p0, %s28_s19), 0  ;;  %p71_p4 = scmp.ne.s32.totalorder %s653_s13, %s649_s12 }
   0x8   : > { %p734_p3 = por %p66_p2, %p65_p1  ;;  %s55_s22 = ssub.s32 %s665_s16, %s862_s19 }
   0x9   : > { %p72_p5 = scmp.eq.s32.totalorder %s435_s18, 0  ;;  %p56_p6 = scmp.eq.s32.totalorder %s55_s22, 0 }
   0xa   : > { %p530_p8 = scmp.lt.s32.totalorder %s669_s17, 6  ;;  %s154_s25 = sand.u32 1, %s657_s14  }
   0xb   : > { %p741_p7 = por %p72_p5, %p71_p4  ;;  %s440_s26 = sshll.u32 %s665_s16, 7 }
   0xc   : > { %s747_s24 = scalar_select %p56_p6, %s657_s14, %s58_s20  }
   0xd   : > { %s439_s27 = sshll.u32 %s154_s25, 7  ;;  %s754_s30 = scalar_lea.hbm %s849_s1, %s440_s26 }
   0xe   : > { %s158_s4 = scalar_lea.vmem [#allocation2], %s439_s27  ;;  %p758_p9 = pnand %p530_p8, %p734_p3 }
   0xf   : > { %s165_s5 = sshll.u32 %s158_s4, 4  ;;  %s765_s7 = scalar_lea.sflag [#allocation3], %s154_s25  ;;  %s762_s5 = int_to_ptr.vmem [resolvable:$true] %s165_s5 }
  0x10   : > { %s589_s8 = scalar_lea.hbm %s754_s30, 2048  ;;  %p591_p12 = pneg %p758_p9 }
  0x11   : > { %p590_p11 = scmp.ne.s32.totalorder %s754_s30, %s589_s8  ;;  %s594_s11 = scalar_lea.hbm %s849_s1, 12288 }
  0x12   : > { %p595_p1 = scmp.lt.u32.totalorder %s754_s30, %s849_s1  ;;  %p596_p2 = scmp.lt.u32.totalorder %s594_s11, %s589_s8 }
  0x13   : > { %p592_p13 = pnand %p591_p12, %p590_p11  ;;  %p598_p4 = scmp.lt.u32.totalorder %s589_s8, %s754_s30 }
  0x14   : > { %p597_p3 = por %p596_p2, %p595_p1 }
  0x15   : > { %p593_p0 = pneg %p592_p13 }
  0x16   : > { %p599_p5 = por %p598_p4, %p597_p3 }
  0x18   : > { %p600_p6 = pnand %p599_p5, %p593_p0 }
  0x1a   : > { %603 = shalt.err (!%p600_p6)
}
  0x1b   : > { %s604_s20 = scalar_lea.vmem %s762_s5, 2048  ;;  %s671_s21 = smov [#allocation2]  }
  0x1c   : > { %p605_p8 = scmp.ne.s32.totalorder %s762_s5, %s604_s20  ;;  %s609_s22 = sshll.u32 %s671_s21, 4  ;;  %s610_s22 = int_to_ptr.vmem [resolvable:$false] %s609_s22 }
  0x1d   : > { %s611_s25 = scalar_lea.vmem %s610_s22, 4096  ;;  %p612_p10 = scmp.lt.s32.totalorder %s762_s5, %s610_s22 }
  0x1e   : > { %p607_p11 = pnand %p605_p8, %p591_p12  ;;  %p613_p1 = scmp.lt.s32.totalorder %s611_s25, %s604_s20 }
  0x20   : > { %p608_p13 = pneg %p607_p11  ;;  %p614_p2 = por %p613_p1, %p612_p10 }
  0x22   : > { %p615_p3 = pnand %p614_p2, %p608_p13 }
  0x24   : > { %618 = shalt.err (!%p615_p3)
}
  0x25   : > { %s672_s26 = smov 768   ;;  %s673_s27 = smov 128  }
  0x26   : > { %s674_s28 = smov 8   ;;  %p182_p12 = scmp.lt.s32.totalorder %s669_s17, 7 }
  0x27   : > { %529 = dma.hbm_to_vmem [thread:$0]  (!%p758_p9), %s754_s30, 2048, %s762_s5, %s765_s7, %s672_s26, %s673_s27, %s674_s28  }
  0x28   : > { %p855_p0 = scmp.ge.s32.totalorder %s669_s17, 1 }
  0x2a   : > { %p183_p4 = pnand %p855_p0, %p182_p12 }
  0x2b   : > { %s188_s29 = sand.u32 (!%p183_p4), 1, %s653_s13  }
  0x2c   : > { %186 = sbr.rel (%p183_p4) target bundleno = 301 (0x12d), region = 32  ;;  %s442_s4 = sshll.u32 (!%p183_p4), %s188_s29, 7 }
  0x2d   : > { %s189_s8 = scalar_lea.sflag (!%p183_p4), [#allocation3], %s188_s29  ;;  %s797_s9 = scalar_lea.vmem (!%p183_p4), [#allocation2], %s442_s4 }
  0x33   : > { %644 = dma.done.wait (%p741_p7), %s189_s8, 2048  }
  0x34   : > { %646 = vsyncadd (%p741_p7), %s189_s8, 4294965248  ;;  %v675_v0 = vmov 0.0|0.0   ;;  %vm676_vm0 = vmmov 0   ;;  %v677_v1 = vmov 0.0   ;;  %v245_v2 = vld [vmem:[%s797_s9] sm:$0xff]  ;;  %v246_v3 = vld [vmem:[%s797_s9 + $0x8] sm:$0xff] }
  0x35   : > { %500 = vmatprep.subr.bf16.mxu0 %v675_v0  ;;  %497 = vmatprep.mubr.msk.f32.mxu0 %vm676_vm0, %v677_v1  ;;  %v247_v4 = vld [vmem:[%s797_s9 + $0x10] sm:$0xff]  ;;  %v501_v5 = vpack.c.bf16 %v246_v3, %v245_v2  ;;  %v248_v6 = vld [vmem:[%s797_s9 + $0x18] sm:$0xff]  ;;  %v249_v8 = vld [vmem:[%s797_s9 + $0x20] sm:$0xff]  ;;  %p224_p7 = scmp.lt.s32.totalorder %s661_s15, 5 }
  0x36   : > { %v504_v7 = vpack.c.bf16 %v248_v6, %v247_v4  ;;  %v250_v9 = vld [vmem:[%s797_s9 + $0x28] sm:$0xff]  ;;  %v237_v10 = vld [vmem:[%s848_s0] sm:$0xff]  ;;  %v251_v13 = vld [vmem:[%s797_s9 + $0x30] sm:$0xff] }
  0x37   : > { %502 = vmatpush3.bf16.msra.mxu0 %v501_v5  ;;  %v444_v11 = vmul.f32 -1.442695, %v237_v10  ;;  %v507_v12 = vpack.c.bf16 %v250_v9, %v249_v8  ;;  %v252_v14 = vld [vmem:[%s797_s9 + $0x38] sm:$0xff]  ;;  %v253_v16 = vld [vmem:[%s797_s9 + $0x40] sm:$0xff]  ;;  %v254_v17 = vld [vmem:[%s797_s9 + $0x48] sm:$0xff]  ;;  %s864_s15 = smov (!%p224_p7, %s661_s15), 5 }
  0x38   : > { %503 = vmatprep.subr.bf16.mxu0 %v675_v0  ;;  %v510_v15 = vpack.c.bf16 %v252_v14, %v251_v13  ;;  %v513_v18 = vpack.c.bf16 %v254_v17, %v253_v16  ;;  %v255_v19 = vld [vmem:[%s797_s9 + $0x50] sm:$0xff]  ;;  %v256_v20 = vld [vmem:[%s797_s9 + $0x58] sm:$0xff]  ;;  %v257_v24 = vld [vmem:[%s797_s9 + $0x60] sm:$0xff]  ;;  %s229_s7 = scalar_lea.vmem %s850_s2, %s864_s15  ;;  %s443_s10 = sshll.u32 %s864_s15, 3 }
  0x39   : > { %585 = vpow2.f32 %v444_v11  ;;  %v516_v22 = vpack.c.bf16 %v256_v20, %v255_v19  ;;  %v258_v25 = vld [vmem:[%s797_s9 + $0x68] sm:$0xff]  ;;  %v259_v27 = vld [vmem:[%s797_s9 + $0x70] sm:$0xff]  ;;  %v260_v28 = vld [vmem:[%s797_s9 + $0x78] sm:$0xff]  ;;  %s236_s18 = scalar_lea.vmem %s851_s3, %s443_s10 }
  0x3a   : > { %v519_v26 = vpack.c.bf16 %v258_v25, %v257_v24  ;;  %v522_v29 = vpack.c.bf16 %v260_v28, %v259_v27  ;;  %v445_v32 = vld [vmem:[%s229_s7] ss:$0 sm:$0xff] }
  0x3b   : > { %505 = vmatpush3.bf16.msra.mxu0 %v504_v7 }
  0x3c   : > { %506 = vmatprep.subr.bf16.mxu0 %v675_v0 }
  0x3f   : > { %508 = vmatpush3.bf16.msra.mxu0 %v507_v12 }
  0x40   : > { %509 = vmatprep.subr.bf16.mxu0 %v675_v0 }
  0x43   : > { %511 = vmatpush3.bf16.msra.mxu0 %v510_v15  ;;  %v586_v21 = vpop.eup %585 }
  0x44   : > { %512 = vmatprep.subr.bf16.mxu0 %v675_v0  ;;  %v241_v23 = vadd.f32 1.0, %v586_v21 }
  0x46   : > { %587 = vrcp.f32 %v241_v23 }
  0x47   : > { %514 = vmatpush3.bf16.msra.mxu0 %v513_v18 }
  0x48   : > { %515 = vmatprep.subr.bf16.mxu0 %v675_v0 }
  0x4b   : > { %517 = vmatpush3.bf16.msra.mxu0 %v516_v22 }
  0x4c   : > { %518 = vmatprep.subr.bf16.mxu0 %v675_v0 }
  0x4f   : > { %520 = vmatpush3.bf16.msra.mxu0 %v519_v26 }
  0x50   : > { %521 = vmatprep.subr.bf16.mxu0 %v675_v0  ;;  %v588_v30 = vpop.eup %587 }
  0x51   : > { %v244_v31 = vmul.f32 %v588_v30, %v237_v10 }
  0x53   : > { %523 = vmatpush3.bf16.msra.mxu0 %v522_v29 }
  0x56   : > { %498 = vmatmul.mubr.f32.vlgmr.msra.gmra.mrb[0].mxu0 %v244_v31 }
 0x129   : > { %v334_v33 = vpop.f32.mrb[0].mxu0 }
 0x12a   : > { %v335_v34 = vadd.f32 %v445_v32, %v334_v33  ;;  %v499_v35 = vpop.f32.mrb[1].mxu0 }
 0x12c   : > { %338 = vst [vmem:[%s236_s18] sm:$0xff] %v335_v34 }
 0x12d PF: > { %s16_s17 = sadd.s32 1, %s669_s17   ;;  %s856_s12 = smov %s653_s13 }
 0x12e   : > { %p13_p9 = scmp.ge.s32.totalorder %s16_s17, 8   ;;  %s857_s13 = smov %s657_s14 }
 0x12f   : > { %s858_s14 = smov %s747_s24  ;;  %s859_s15 = smov %s665_s16 }
 0x130   : > { %s860_s16 = smov %s862_s19  ;;  %15 = sbr.rel (!%p13_p9) target bundleno = 4 (0x4), region = 75 }
 0x137   :  { %364 = vsyncpa [#allocation3], 1 }
 0x138   :  { %366 = vsyncpa [#allocation3 + $0x1], 1 }

// kernel: ada_layer_norm_zero.3
= control target key start
LH: loop header
LB: loop body
LE: loop exit
PB: predicated region body
PF: predicated region fallthrough
CT: control target
= control target key end

     0   :  { %8 = vsyncpa [#allocation3], 0  ;;  %s693_s0 = inlined_call_operand.vmem [shape: f32[2,16,128], index: 0, kind: input, shape index: {}]   ;;  %s694_s1 = inlined_call_operand.vmem [shape: f32[2,1,128], index: 1, kind: input, shape index: {}]   ;;  %s695_s2 = inlined_call_operand.vmem [shape: f32[2,1,128], index: 2, kind: input, shape index: {}]   ;;  %s696_s3 = inlined_call_operand.hbm [shape: f32[2,16,128], index: 3, kind: output, shape index: {}]  }
   0x1   :  { %10 = vsyncpa [#allocation3 + $0x1], 0  ;;  %s567_s12 = smov 0   ;;  %s569_s13 = smov 0  }
   0x2   :  { %s571_s14 = smov 0   ;;  %s573_s15 = smov 0  }
   0x3   :  { %s575_s16 = smov 0   ;;  %s577_s17 = smov 0  }
   0x4 LB: > { %s387_s18 = sadd.s32 4294967295, %s542_s17   ;;  %s388_s19 = sadd.s32 4294967294, %s542_s17   ;;  %s542_s17 = sphi %s577_s17, %s16_s17   ;;  %s538_s16 = sphi %s575_s16, %s703_s16   ;;  %s534_s15 = sphi %s573_s15, %s702_s15   ;;  %s530_s14 = sphi %s571_s14, %s701_s14   ;;  %s526_s13 = sphi %s569_s13, %s700_s13   ;;  %s522_s12 = sphi %s567_s12, %s699_s12  }
   0x5   : > { %s28_s20 = sadd.s32 1, %s538_s16  ;;  %s117_s21 = sadd.s32 1, %s530_s14 }
   0x6   : > { %p30_p0 = scmp.ge.s32.totalorder %s28_s20, 2  ;;  %p127_p1 = scmp.ne.s32.totalorder %s530_s14, %s526_s13 }
   0x7   : > { %p128_p2 = scmp.eq.s32.totalorder %s387_s18, 1  ;;  %p133_p3 = scmp.ne.s32.totalorder %s526_s13, %s522_s12 }
   0x8   : > { %s705_s20 = smov (%p30_p0, %s28_s20), 0  ;;  %p134_p5 = scmp.eq.s32.totalorder %s388_s19, 1 }
   0x9   : > { %p607_p4 = por %p128_p2, %p127_p1  ;;  %s112_s23 = ssub.s32 %s538_s16, %s705_s20 }
   0xa   : > { %p391_p6 = scmp.ge.s32.totalorder %s542_s17, 1  ;;  %p115_p7 = scmp.eq.s32.totalorder %s112_s23, 0 }
   0xb   : > { %p614_p8 = por %p134_p5, %p133_p3  ;;  %p177_p9 = scmp.lt.s32.totalorder %s542_s17, 3 }
   0xc   : > { %s620_s25 = scalar_select %p115_p7, %s530_s14, %s117_s21  }
   0xd   : > { %p178_p10 = pnand %p391_p6, %p177_p9 }
   0xe   : > { %p212_p11 = scmp.lt.s32.totalorder (!%p178_p10), %s534_s15, 1  ;;  %v257_v12 = vlaneseq (!%p178_p10)  ;;  %s208_s7 = sand.u32 (!%p178_p10), 1, %s526_s13  }
   0xf   : > { %181 = sbr.rel (%p178_p10) target bundleno = 357 (0x165), region = 32  ;;  %s392_s11 = sshll.u32 (!%p178_p10), %s208_s7, 4 }
  0x10   : > { %v258_v16 = vshrl.u32 (!%p178_p10), %v257_v12, 7  ;;  %s402_s18 = sshll.u32 (!%p178_p10), %s534_s15, 8  ;;  %s210_s19 = scalar_lea.vmem (!%p178_p10), [#allocation2], %s392_s11 }
  0x11   : > { %s290_s21 = sshll.u32 (!%p178_p10), %s210_s19, 4  ;;  %s643_s28 = scalar_lea.hbm (!%p178_p10), %s696_s3, %s402_s18  ;;  %s645_s21 = int_to_ptr.vmem [resolvable:$true] %s290_s21 }
  0x12   : > { %v259_v20 = vsub.s32 (!%p178_p10), 0, %v258_v16  ;;  %s464_s29 = scalar_lea.vmem (!%p178_p10), %s645_s21, 256 }
  0x13   : > { %p465_p12 = scmp.ne.s32.totalorder (!%p178_p10), %s645_s21, %s464_s29 }
  0x15   : > { %p466_p13 = pnand (!%p178_p10), %p465_p12, %p607_p4 }
  0x16   : > { %s624_s26 = scalar_select %p212_p11, %s534_s15, 1 }
  0x17   : > { %p467_p0 = pneg %p466_p13  ;;  %s544_s15 = smov [#allocation2]  }
  0x18   : > { %s401_s27 = sshll.u32 %s624_s26, 4  ;;  %s223_s6 = scalar_lea.vmem %s694_s1, %s624_s26 }
  0x19   : > { %s219_s30 = scalar_lea.vmem %s693_s0, %s401_s27  ;;  %v253_v17 = vld [vmem:[%s223_s6] sm:$0x1]  ;;  %s226_s10 = scalar_lea.vmem %s695_s2, %s624_s26 }
  0x1a   : > { %v228_v0 = vld [vmem:[%s219_s30] sm:$0xff]  ;;  %v229_v1 = vld [vmem:[%s219_s30 + $0x8] sm:$0xff]  ;;  %v255_v19 = vadd.f32 1.0, %v253_v17  ;;  %s647_s26 = scalar_lea.sflag [#allocation3], %s208_s7  ;;  %s468_s30 = sshll.u32 %s544_s15, 4  ;;  %s469_s30 = int_to_ptr.vmem [resolvable:$false] %s468_s30 }
  0x1b   : > { %230 = vadd.xlane.f32.xlu0 %v228_v0  ;;  %v395_v24 = vld [vmem:[%s226_s10] ss:$0 sm:$0xff]  ;;  %s470_s4 = scalar_lea.vmem %s469_s30, 512  ;;  %p471_p1 = scmp.lt.s32.totalorder %s645_s21, %s469_s30 }
  0x1c   : > { %v260_v21 = vrot.slane %v255_v19, %v259_v20  ;;  %p472_p2 = scmp.lt.s32.totalorder %s470_s4, %s464_s29 }
  0x1e   : > { %p473_p3 = por %p472_p2, %p471_p1 }
  0x1f   : > { %232 = vadd.xlane.f32.xlu0 %v229_v1 }
  0x20   : > { %p474_p5 = pnand %p473_p3, %p467_p0 }
  0xa8   : > { %v231_v2 = vpop.xlane.xlu0 %230 }
  0xa9   : > { %v235_v3 = vmul.f32 0.0078125, %v231_v2 }
  0xab   : > { %v237_v4 = vsub.f32 %v228_v0, %v235_v3 }
  0xac   : > { %v233_v5 = vpop.xlane.xlu0 %232 }
  0xad   : > { %v236_v6 = vmul.f32 0.0078125, %v233_v5  ;;  %v239_v7 = vmul.f32 %v237_v4, %v237_v4 }
  0xaf   : > { %v238_v8 = vsub.f32 %v229_v1, %v236_v6  ;;  %241 = vadd.xlane.f32.xlu1 %v239_v7 }
  0xb1   : > { %v240_v9 = vmul.f32 %v238_v8, %v238_v8 }
  0xb3   : > { %243 = vadd.xlane.f32.xlu1 %v240_v9 }
 0x13c   : > { %v242_v10 = vpop.xlane.xlu1 %241 }
 0x13d   : > { %v245_v11 = vmul.f32 0.0078125, %v242_v10 }
 0x13f   : > { %v247_v13 = vadd.f32 1e-06, %v245_v11 }
 0x140   : > { %v244_v14 = vpop.xlane.xlu1 %243 }
 0x141   : > { %460 = vrsqrt.f32 %v247_v13  ;;  %v246_v15 = vmul.f32 0.0078125, %v244_v14 }
 0x143   : > { %v248_v18 = vadd.f32 1e-06, %v246_v15 }
 0x145   : > { %462 = vrsqrt.f32 %v248_v18 }
 0x14b   : > { %v461_v22 = vpop.eup %460 }
 0x14c   : > { %v251_v23 = vmul.f32 %v461_v22, %v237_v4 }
 0x14e   : > { %v262_v25 = vmul.f32 %v260_v21, %v251_v23 }
 0x14f   : > { %v463_v26 = vpop.eup %462 }
 0x150   : > { %v252_v27 = vmul.f32 %v463_v26, %v238_v8  ;;  %v270_v28 = vadd.f32 %v395_v24, %v262_v25 }
 0x152   : > { %v263_v29 = vmul.f32 %v260_v21, %v252_v27  ;;  %272 = vst [vmem:[%s210_s19] sm:$0xff] %v270_v28 }
 0x154   : > { %v271_v30 = vadd.f32 %v395_v24, %v263_v29 }
 0x156   : > { %273 = vst [vmem:[%s210_s19 + $0x8] sm:$0xff] %v271_v30 }
 0x157   : > { %477 = shalt.err (!%p474_p5)
}
 0x158   : > { %s478_s5 = scalar_lea.hbm %s643_s28, 256  ;;  %s482_s8 = scalar_lea.hbm %s696_s3, 512 }
 0x159   : > { %p479_p6 = scmp.ne.s32.totalorder %s643_s28, %s478_s5  ;;  %p483_p10 = scmp.lt.u32.totalorder %s643_s28, %s696_s3 }
 0x15a   : > { %p484_p11 = scmp.lt.u32.totalorder %s482_s8, %s478_s5  ;;  %p486_p13 = scmp.lt.u32.totalorder %s478_s5, %s643_s28 }
 0x15b   : > { %p480_p7 = pnand %p479_p6, %p607_p4 }
 0x15c   : > { %p485_p12 = por %p484_p11, %p483_p10 }
 0x15d   : > { %p481_p9 = pneg %p480_p7 }
 0x15e   : > { %p487_p0 = por %p486_p13, %p485_p12 }
 0x160   : > { %p488_p1 = pnand %p487_p0, %p481_p9 }
 0x162   : > { %491 = shalt.err (!%p488_p1)
}
 0x163   : > { %s545_s11 = smov 128   ;;  %s546_s18 = smov 8  }
 0x164   : > { %403 = dma.vmem_to_hbm [thread:$0]  (%p607_p4), %s645_s21, 256, %s643_s28, %s647_s26, %s545_s11, %s545_s11, %s546_s18  }
 0x165 PF: > { %p409_p2 = scmp.ge.s32.totalorder %s542_s17, 2  ;;  %s305_s19 = sand.u32 1, %s522_s12  }
 0x166   : > { %s306_s23 = scalar_lea.sflag [#allocation3], %s305_s19 }
 0x167   : > { %p406_p3 = pnand %p409_p2, %p614_p8 }
 0x169   : > { %517 = dma.done.wait (!%p406_p3), %s306_s23, 256  }
 0x16a   : > { %519 = vsyncadd (!%p406_p3), %s306_s23, 4294967040  ;;  %s16_s17 = sadd.s32 1, %s542_s17   ;;  %s699_s12 = smov %s526_s13 }
 0x16b   : > { %p13_p5 = scmp.ge.s32.totalorder %s16_s17, 4   ;;  %s700_s13 = smov %s530_s14 }
 0x16c   : > { %s701_s14 = smov %s620_s25  ;;  %s702_s15 = smov %s538_s16 }
 0x16d   : > { %s703_s16 = smov %s705_s20  ;;  %15 = sbr.rel (!%p13_p5) target bundleno = 4 (0x4), region = 73 }
 0x174   :  { %311 = vsyncpa [#allocation3], 1 }
 0x175   :  { %313 = vsyncpa [#allocation3 + $0x1], 1 }

</bundles_post_ra>
